<compile_context>
chip_gen: v7x
topology: tpu7x:2x2x1
jax: 0.10.0
libtpu: 0.0.40
codegen_flags: <defaults>
</compile_context>

<pallas_src>
import warnings

import jax
import jax.numpy as jnp
from jax.experimental import pallas as pl
from jax.experimental.pallas import tpu as pltpu


# ----------------------------------------------------------------------------
# Trace-time chunk planning (static Python; no tracing of shapes involved)
# ----------------------------------------------------------------------------
def _plan_chunks(shape, itemsize, target_chunk_bytes, max_chunks):
    """Split the leading axis into contiguous (start, size) chunks.

    Returns () when chunking is not possible / not worthwhile (rank-0 arrays,
    a single leading row, or the array is too small for >1 chunk).
    """
    if not shape or shape[0] <= 1:
        return ()
    rows = int(shape[0])
    row_bytes = int(itemsize)
    for d in shape[1:]:
        row_bytes *= int(d)
    total_bytes = rows * row_bytes

    n = min(int(max_chunks), rows,
            max(1, total_bytes // max(1, int(target_chunk_bytes))))
    n = int(n)
    if n <= 1:
        return ()

    base, rem = divmod(rows, n)
    chunks, start = [], 0
    for i in range(n):
        size = base + (1 if i < rem else 0)
        if size > 0:
            chunks.append((start, size))
        start += size
    return tuple(chunks)


# ----------------------------------------------------------------------------
# Kernels
# ----------------------------------------------------------------------------
def _make_identity_dma_kernel(chunks):
    """Build an HBM->HBM identity-copy kernel.

    chunks == ()  -> single whole-array DMA, one () semaphore.
    chunks == (k,)... -> k concurrent DMAs on a (k,) semaphore array.
    """
    if len(chunks) <= 1:

        def kernel(x_hbm_ref, o_hbm_ref, copy_sem):
            cp = pltpu.make_async_copy(x_hbm_ref, o_hbm_ref, copy_sem)
            cp.start()
            cp.wait()

        return kernel

    def kernel(x_hbm_ref, o_hbm_ref, copy_sems):
        # Build all descriptors (static slices along the leading axis),
        # start them back-to-back so they are all in flight, then wait.
        cps = []
        for i, (start, size) in enumerate(chunks):
            cps.append(
                pltpu.make_async_copy(
                    x_hbm_ref.at[pl.ds(start, size)],
                    o_hbm_ref.at[pl.ds(start, size)],
                    copy_sems.at[i],
                )
            )
        for cp in cps:
            cp.start()
        for cp in cps:
            cp.wait()

    return kernel


def _alias_identity_kernel(x_hbm_ref, o_hbm_ref):
    # Output physically aliases the input buffer (input_output_aliases={0: 0}
    # on the pallas_call), so the data is already in place; nothing to do.
    pass


# ----------------------------------------------------------------------------
# Wrappers
# ----------------------------------------------------------------------------
def custom_forward(
    x,
    *,
    min_pallas_bytes=64 * 1024,       # below this: pure pass-through, no kernel
    min_chunked_bytes=4 * 1024 * 1024,  # below this: single whole-array DMA
    target_chunk_bytes=1024 * 1024,   # aim for >= ~1 MiB per chunk DMA
    max_chunks=8,                     # cap on concurrent in-flight DMAs
):
    """Pallas implementation of Custom.forward (identity)."""
    nbytes = int(x.size) * x.dtype.itemsize

    # Tiny (or empty) tensors: launch + DMA-descriptor overhead would be
    # 10-100x the copy time.  Identity semantics are exact either way.
    if nbytes == 0 or nbytes < min_pallas_bytes:
        return x

    chunks = ()
    if nbytes >= min_chunked_bytes:
        chunks = _plan_chunks(x.shape, x.dtype.itemsize,
                              target_chunk_bytes, max_chunks)

    if len(chunks) <= 1:
        sem_spec = pltpu.SemaphoreType.DMA(())
    else:
        sem_spec = pltpu.SemaphoreType.DMA((len(chunks),))

    kernel = _make_identity_dma_kernel(chunks)

    return pl.pallas_call(
        kernel,
        out_shape=jax.ShapeDtypeStruct(x.shape, x.dtype),
        in_specs=[pl.BlockSpec(memory_space=pl.ANY)],
        out_specs=pl.BlockSpec(memory_space=pl.ANY),
        scratch_shapes=[sem_spec],
        cost_estimate=pl.CostEstimate(
            flops=0, transcendentals=0, bytes_accessed=2 * nbytes
        ),
    )(x)


def custom_forward_donated(x):
    """Zero-copy identity: output aliases the (donated) input buffer.

    Use under jax.jit(..., donate_argnums=...).  Without donation XLA inserts
    a defensive full copy before the call, making this no better than the
    DMA path in `custom_forward`.
    """
    return pl.pallas_call(
        _alias_identity_kernel,
        out_shape=jax.ShapeDtypeStruct(x.shape, x.dtype),
        in_specs=[pl.BlockSpec(memory_space=pl.ANY)],
        out_specs=pl.BlockSpec(memory_space=pl.ANY),
        input_output_aliases={0: 0},
        cost_estimate=pl.CostEstimate(
            flops=0, transcendentals=0, bytes_accessed=0
        ),
    )(x)


# ----------------------------------------------------------------------------
# Self-test
# ----------------------------------------------------------------------------
if __name__ == "__main__":
    key = jax.random.PRNGKey(0)
    k1, k2, k3 = jax.random.split(key, 3)

    # Module default input_dim=2048; small batch of 8 -> (8, 2048) f32 = 64 KiB.
    x = jax.random.normal(k1, (8, 2048), dtype=jnp.float32)

    # 1) Tiny-tensor short-circuit (no pallas_call; pure pass-through).
    x_tiny = jax.random.normal(k2, (2, 32), dtype=jnp.float32)
    y_tiny = jax.block_until_ready(custom_forward(x_tiny))
    assert y_tiny.shape == x_tiny.shape and y_tiny.dtype == x_tiny.dtype
    assert bool(jnp.all(y_tiny == x_tiny))

    # 2) Single whole-array HBM->HBM DMA path.
    y_single = jax.block_until_ready(custom_forward(x, min_pallas_bytes=0))
    assert y_single.shape == x.shape and y_single.dtype == x.dtype
    assert bool(jnp.all(y_single == x))

    # 3) Chunked concurrent-DMA path (forced with a small chunk size so the
    #    64 KiB test tensor is split into 4 in-flight DMAs).
    y_chunked = jax.block_until_ready(
        custom_forward(
            x,
            min_pallas_bytes=0,
            min_chunked_bytes=0,
            target_chunk_bytes=16 * 1024,
            max_chunks=4,
        )
    )
    assert y_chunked.shape == x.shape and y_chunked.dtype == x.dtype
    assert bool(jnp.all(y_chunked == x))

    # 4) Zero-copy donated/aliased path under jit with an actually-donated buffer.
    x_don = jax.random.normal(k3, (8, 2048), dtype=jnp.float32)
    x_expected = jax.random.normal(k3, (8, 2048), dtype=jnp.float32)  # same values
    donated_fn = jax.jit(custom_forward_donated, donate_argnums=0)
    with warnings.catch_warnings():
        warnings.simplefilter("ignore")  # in case donation is not honored on this backend
        y_don = jax.block_until_ready(donated_fn(x_don))
    assert y_don.shape == x_expected.shape and y_don.dtype == x_expected.dtype
    assert bool(jnp.all(y_don == x_expected))

    print("KERNEL_OK")
</pallas_src>

<mosaic_0001>
module attributes {stable_mosaic.version = 11 : i64} {
  func.func @kernel(%arg0: memref<8x2048xf32, #tpu.memory_space<any>>, %arg1: memref<8x2048xf32, #tpu.memory_space<any>>, %arg2: memref<!tpu.dma_semaphore, #tpu.memory_space<semaphore_mem>>) attributes {dimension_semantics = [], scalar_prefetch = 0 : i64, scratch_operands = 1 : i64, tpu.core_type = #tpu.core_type<tc>} {
    tpu.enqueue_dma source(%arg0 : memref<8x2048xf32, #tpu.memory_space<any>>) target(%arg1 : memref<8x2048xf32, #tpu.memory_space<any>>) target_semaphore(%arg2 : memref<!tpu.dma_semaphore, #tpu.memory_space<semaphore_mem>>)
    tpu.wait_dma2 semaphore(%arg2 : memref<!tpu.dma_semaphore, #tpu.memory_space<semaphore_mem>>) src(%arg0 : memref<8x2048xf32, #tpu.memory_space<any>>) dst(%arg1 : memref<8x2048xf32, #tpu.memory_space<any>>)
    return
  }
}

</mosaic_0001>

<bundles_post_ra>
// kernel: tpu_custom_call.1
= control target key start
LH: loop header
LB: loop body
LE: loop exit
PB: predicated region body
PF: predicated region fallthrough
CT: control target
= control target key end

     0   :  { %s35_s6 = smov [#allocation2]   ;;  %s36_s7 = smov [#allocation3]   ;;  %s54_s0 = inlined_call_operand.hbm [shape: f32[8,2048], index: 0, kind: input, shape index: {}]   ;;  %s55_s1 = inlined_call_operand.hbm [shape: f32[8,2048], index: 1, kind: output, shape index: {}]  }
   0x1   :  { %s37_s8 = smov 0  }
   0x2   :  { %18 = dma.general %s54_s0, 2048, %s55_s1, %s35_s6, %s36_s7, [#allocation4], %s37_s8, 0  }
   0x3   :  { %33 = dma.done.wait [#allocation2], 2048 }
   0x4   :  { %34 = vsyncadd [#allocation2], 4294965248 }
   0x5   :  { %23 = vsyncmov [#allocation2] }
   0x8   :  { %s24_s13 = vpop.sfrf %23 }
   0x9   :  { %p29_p0 = scmp.ne.s32.totalorder %s24_s13, 0 }
   0xb   :  { %28 = shalt.err (%p29_p0)  }

</bundles_post_ra>
